<compile_context>
chip_gen: v7x
topology: tpu7x:2x2x1
jax: 0.10.0
libtpu: 0.0.40
codegen_flags: <defaults>
</compile_context>

<pallas_src>
import functools
import math

import jax
import jax.numpy as jnp
from jax import lax
from jax.experimental import pallas as pl
from jax.experimental.pallas import tpu as pltpu

_NEG_BIG = -1e30  # finite mask value (avoids inf - inf -> NaN in online softmax)


def _pick_tile(dim, target, step=128):
    """Largest tile <= target that divides dim; prefers multiples of `step`,
    falls back to the full dim (always a legal block)."""
    if dim <= target:
        return dim
    t = (target // step) * step
    while t >= step:
        if dim % t == 0:
            return t
        t -= step
    return dim


# ------------------------- Linear: y = x @ W^T + b ------------------------- #

def _linear_kernel(x_ref, w_ref, b_ref, o_ref, acc_ref):
    # x: (tm, tk) bf16, w: (tn, tk) bf16 (torch (out,in) layout), b: (1, tn) f32
    k = pl.program_id(2)

    @pl.when(k == 0)
    def _init():
        acc_ref[...] = jnp.zeros_like(acc_ref)

    acc_ref[...] += lax.dot_general(
        x_ref[...], w_ref[...],
        dimension_numbers=(((1,), (1,)), ((), ())),   # contract K of both (no .T)
        preferred_element_type=jnp.float32)

    @pl.when(k == pl.num_programs(2) - 1)
    def _finalize():
        o_ref[...] = (acc_ref[...] + b_ref[...]).astype(o_ref.dtype)


def linear(x, w, b, *, out_dtype=jnp.float32,
           tm_target=256, tn_target=256, tk_target=512):
    """y = x @ w.T + b.  x: (M, K), w: (N, K) torch layout, b: (N,)."""
    M, K = x.shape
    N = w.shape[0]
    tm = _pick_tile(M, tm_target)
    tn = _pick_tile(N, tn_target)
    tk = _pick_tile(K, tk_target)
    b2 = b.astype(jnp.float32).reshape(1, N)

    cost = pl.CostEstimate(
        flops=2 * M * N * K,
        transcendentals=0,
        bytes_accessed=int(2 * M * K + 2 * N * K + 4 * N + 4 * M * N))

    return pl.pallas_call(
        _linear_kernel,
        out_shape=jax.ShapeDtypeStruct((M, N), out_dtype),
        grid_spec=pltpu.PrefetchScalarGridSpec(
            num_scalar_prefetch=0,
            grid=(M // tm, N // tn, K // tk),
            in_specs=[
                pl.BlockSpec((tm, tk), lambda i, j, k: (i, k)),
                pl.BlockSpec((tn, tk), lambda i, j, k: (j, k)),
                pl.BlockSpec((1, tn), lambda i, j, k: (0, j)),
            ],
            out_specs=pl.BlockSpec((tm, tn), lambda i, j, k: (i, j)),
            scratch_shapes=[pltpu.VMEM((tm, tn), jnp.float32)],
        ),
        compiler_params=pltpu.CompilerParams(
            dimension_semantics=("parallel", "parallel", "arbitrary")),
        cost_estimate=cost,
    )(x, w, b2)


# --------------------- Flash causal self-attention (v == q) --------------------- #

def _flash_attn_kernel(q_ref, k_ref, v_ref, o_ref, m_ref, l_ref, acc_ref,
                       *, n_head, head_dim, tq, tk, scale):
    qi = pl.program_id(1)
    ki = pl.program_id(2)

    @pl.when(ki == 0)
    def _init():
        m_ref[...] = jnp.full_like(m_ref, _NEG_BIG)
        l_ref[...] = jnp.zeros_like(l_ref)
        acc_ref[...] = jnp.zeros_like(acc_ref)

    # KV tiles entirely above the causal diagonal contribute nothing: skip them.
    @pl.when(ki <= qi)
    def _compute():
        qs = q_ref[...] * scale          # (tq, C) bf16, pre-scaled (T*C muls, not T*T)
        kt = k_ref[...]                  # (tk, C) bf16
        vt = v_ref[...]                  # (tk, C) bf16  (== Q projection at KV rows)

        q_pos = qi * tq + lax.broadcasted_iota(jnp.int32, (tq, tk), 0)
        k_pos = ki * tk + lax.broadcasted_iota(jnp.int32, (tq, tk), 1)
        causal = q_pos >= k_pos

        dn_qk = (((1,), (1,)), ((), ()))     # contract head_dim of q and k (no k.T)
        for h in range(n_head):
            sl = slice(h * head_dim, (h + 1) * head_dim)
            hc = slice(h, h + 1)

            s = lax.dot_general(qs[:, sl], kt[:, sl], dimension_numbers=dn_qk,
                                preferred_element_type=jnp.float32)      # (tq, tk)
            s = jnp.where(causal, s, _NEG_BIG)

            m_prev = m_ref[:, hc]                                        # (tq, 1)
            m_new = jnp.maximum(m_prev, jnp.max(s, axis=-1, keepdims=True))
            alpha = jnp.exp(m_prev - m_new)
            p = jnp.exp(s - m_new)                                       # (tq, tk) f32

            l_ref[:, hc] = alpha * l_ref[:, hc] + jnp.sum(p, axis=-1, keepdims=True)
            acc_ref[:, sl] = alpha * acc_ref[:, sl] + jnp.dot(
                p.astype(vt.dtype), vt[:, sl], preferred_element_type=jnp.float32)
            m_ref[:, hc] = m_new

    # Finalize on the diagonal tile (last contributing KV tile for this q tile);
    # the output block stays resident in VMEM until the q-tile block index changes.
    @pl.when(ki == qi)
    def _finalize():
        outs = []
        for h in range(n_head):
            inv_l = pl.reciprocal(l_ref[:, h:h + 1], approx=True)        # EUP slot
            outs.append(acc_ref[:, h * head_dim:(h + 1) * head_dim] * inv_l)
        o_ref[...] = jnp.concatenate(outs, axis=1).astype(o_ref.dtype)   # lane-dense (tq, C)


def flash_attention(q2d, k2d, *, batch, seq_len, n_head,
                    tq_target=128, tk_target=128):
    """Causal multi-head attention with v == q (reference module quirk).

    q2d, k2d: (B*T, C) bf16 projections in (batch*time, embed) layout.
    Returns (B*T, C) bf16 in the same layout (no head transposes outside the kernel).
    """
    BT, C = q2d.shape
    assert BT == batch * seq_len and C % n_head == 0
    head_dim = C // n_head
    scale = 1.0 / math.sqrt(head_dim)

    tq = _pick_tile(seq_len, tq_target)
    tk = tq                                   # equal tiles keep diagonal skipping exact
    nq = seq_len // tq
    nk = seq_len // tk

    kernel = functools.partial(
        _flash_attn_kernel, n_head=n_head, head_dim=head_dim, tq=tq, tk=tk, scale=scale)

    q_spec = pl.BlockSpec((tq, C), lambda b, qi, ki: (b * nq + qi, 0))
    kv_spec = pl.BlockSpec((tk, C), lambda b, qi, ki: (b * nk + ki, 0))
    o_spec = pl.BlockSpec((tq, C), lambda b, qi, ki: (b * nq + qi, 0))

    cost = pl.CostEstimate(
        flops=2 * batch * n_head * seq_len * seq_len * head_dim,     # causal-halved qk + pv
        transcendentals=batch * n_head * seq_len * seq_len // 2,
        bytes_accessed=int(2 * 4 * BT * C))

    return pl.pallas_call(
        kernel,
        out_shape=jax.ShapeDtypeStruct((BT, C), q2d.dtype),
        grid_spec=pltpu.PrefetchScalarGridSpec(
            num_scalar_prefetch=0,
            grid=(batch, nq, nk),
            in_specs=[q_spec, kv_spec, kv_spec],
            out_specs=o_spec,
            scratch_shapes=[
                pltpu.VMEM((tq, n_head), jnp.float32),   # running max m (per head column)
                pltpu.VMEM((tq, n_head), jnp.float32),   # running sum l
                pltpu.VMEM((tq, C), jnp.float32),        # output accumulator
            ],
        ),
        compiler_params=pltpu.CompilerParams(
            dimension_semantics=("parallel", "parallel", "arbitrary")),
        cost_estimate=cost,
    )(q2d, k2d, q2d)   # v == q: third input is the Q projection read at the KV rows


# -------------------------------- Module glue -------------------------------- #

def init_params(key, n_embd):
    """nn.Linear-style init (U(-1/sqrt(fan_in), +1/sqrt(fan_in))), torch layouts."""
    k1, k2, k3, k4 = jax.random.split(key, 4)
    bound = 1.0 / math.sqrt(n_embd)
    w_attn = jax.random.uniform(k1, (3 * n_embd, n_embd), jnp.float32, -bound, bound)
    b_attn = jax.random.uniform(k2, (3 * n_embd,), jnp.float32, -bound, bound)
    w_proj = jax.random.uniform(k3, (n_embd, n_embd), jnp.float32, -bound, bound)
    b_proj = jax.random.uniform(k4, (n_embd,), jnp.float32, -bound, bound)
    return dict(w_attn=w_attn, b_attn=b_attn, w_proj=w_proj, b_proj=b_proj)


def causal_self_attention(x, params, n_head):
    """Forward pass of minGPT CausalSelfAttention (inference / eval mode)."""
    B, T, C = x.shape
    assert C % n_head == 0

    x2 = x.reshape(B * T, C).astype(jnp.bfloat16)

    # c_attn: only the Q and K thirds are live — the reference does
    # `v = q.view(...)`, so the V projection (rows 2C:3C of w_attn) is dead weight.
    w_attn = params["w_attn"]
    b_attn = params["b_attn"]
    w_q = w_attn[:C].astype(jnp.bfloat16)
    w_k = w_attn[C:2 * C].astype(jnp.bfloat16)
    q2d = linear(x2, w_q, b_attn[:C], out_dtype=jnp.bfloat16)         # (B*T, C)
    k2d = linear(x2, w_k, b_attn[C:2 * C], out_dtype=jnp.bfloat16)    # (B*T, C)

    # Flash attention directly on the (B*T, C) buffers; output already in (B*T, C).
    y2d = flash_attention(q2d, k2d, batch=B, seq_len=T, n_head=n_head)

    # c_proj.
    # TODO(synk): attn_pdrop / resid_pdrop applied as eval-mode identity (no RNG dropout).
    y = linear(y2d, params["w_proj"].astype(jnp.bfloat16), params["b_proj"],
               out_dtype=jnp.float32)                                  # (B*T, C)
    return y.reshape(B, T, C)


if __name__ == "__main__":
    B, T, C, n_head = 2, 8, 32, 4   # block_size >= T

    key = jax.random.PRNGKey(0)
    kx, kp = jax.random.split(key)
    x = jax.random.normal(kx, (B, T, C), dtype=jnp.float32)
    params = init_params(kp, C)

    fwd = jax.jit(functools.partial(causal_self_attention, n_head=n_head))
    y = fwd(x, params)
    jax.block_until_ready(y)
    assert y.shape == (B, T, C) and y.dtype == jnp.float32
    assert bool(jnp.all(jnp.isfinite(y)))
    print("KERNEL_OK")
</pallas_src>

<mosaic_0001>
module attributes {stable_mosaic.version = 11 : i64} {
  func.func @_linear_kernel(%arg0: i32, %arg1: i32, %arg2: i32, %arg3: memref<16x32xbf16, #tpu.memory_space<vmem>>, %arg4: memref<32x32xbf16, #tpu.memory_space<vmem>>, %arg5: memref<1x32xf32, #tpu.memory_space<vmem>>, %arg6: memref<16x32xf32, #tpu.memory_space<vmem>>, %arg7: memref<16x32xf32, #tpu.memory_space<vmem>>) attributes {dimension_semantics = [#tpu.dimension_semantics<parallel>, #tpu.dimension_semantics<parallel>, #tpu.dimension_semantics<arbitrary>], iteration_bounds = array<i64: 1, 1, 1>, scalar_prefetch = 0 : i64, scratch_operands = 1 : i64, tpu.core_type = #tpu.core_type<tc>, window_params = [{transform_indices = @transform_0, window_bounds = array<i64: 16, 32>}, {transform_indices = @transform_1, window_bounds = array<i64: 32, 32>}, {transform_indices = @transform_2, window_bounds = array<i64: 1, 32>}, {transform_indices = @transform_3, window_bounds = array<i64: 16, 32>}]} {
    %c0_i32 = arith.constant 0 : i32
    %0 = arith.cmpi eq, %arg2, %c0_i32 : i32
    %1 = arith.extui %0 : i1 to i32
    %c0_i32_0 = arith.constant 0 : i32
    %2 = arith.cmpi ne, %1, %c0_i32_0 : i32
    scf.if %2 {
      %cst_10 = arith.constant 0.000000e+00 : f32
      %12 = vector.broadcast %cst_10 : f32 to vector<16x32xf32>
      %c0_11 = arith.constant 0 : index
      %c0_12 = arith.constant 0 : index
      %13 = vector.load %arg7[%c0_11, %c0_12] : memref<16x32xf32, #tpu.memory_space<vmem>>, vector<16x32xf32>
      tpu.vector_store %arg7[%c0_11, %c0_12], %12 {strides = array<i32>} : memref<16x32xf32, #tpu.memory_space<vmem>>, vector<16x32xf32>,
    } else {
    }
    %c0 = arith.constant 0 : index
    %c0_1 = arith.constant 0 : index
    %3 = vector.load %arg7[%c0, %c0_1] : memref<16x32xf32, #tpu.memory_space<vmem>>, vector<16x32xf32>
    %c0_2 = arith.constant 0 : index
    %c0_3 = arith.constant 0 : index
    %4 = vector.load %arg3[%c0_2, %c0_3] : memref<16x32xbf16, #tpu.memory_space<vmem>>, vector<16x32xbf16>
    %c0_4 = arith.constant 0 : index
    %c0_5 = arith.constant 0 : index
    %5 = vector.load %arg4[%c0_4, %c0_5] : memref<32x32xbf16, #tpu.memory_space<vmem>>, vector<32x32xbf16>
    %cst = arith.constant dense<0.000000e+00> : vector<16x32xf32>
    %6 = tpu.matmul %4, %5, %cst {dimension_numbers = #tpu.dot_dimension_numbers<[1], [1], [0], [0], [0, 0, 1, 0], [], []>} : vector<16x32xbf16>, vector<32x32xbf16>, vector<16x32xf32> -> vector<16x32xf32>
    %7 = arith.addf %3, %6 : vector<16x32xf32>
    %c0_6 = arith.constant 0 : index
    %c0_7 = arith.constant 0 : index
    %8 = vector.load %arg7[%c0_6, %c0_7] : memref<16x32xf32, #tpu.memory_space<vmem>>, vector<16x32xf32>
    tpu.vector_store %arg7[%c0_6, %c0_7], %7 {strides = array<i32>} : memref<16x32xf32, #tpu.memory_space<vmem>>, vector<16x32xf32>,
    %c0_i32_8 = arith.constant 0 : i32
    %9 = arith.cmpi eq, %arg2, %c0_i32_8 : i32
    %10 = arith.extui %9 : i1 to i32
    %c0_i32_9 = arith.constant 0 : i32
    %11 = arith.cmpi ne, %10, %c0_i32_9 : i32
    scf.if %11 {
      %c0_10 = arith.constant 0 : index
      %c0_11 = arith.constant 0 : index
      %12 = vector.load %arg7[%c0_10, %c0_11] : memref<16x32xf32, #tpu.memory_space<vmem>>, vector<16x32xf32>
      %c0_12 = arith.constant 0 : index
      %c0_13 = arith.constant 0 : index
      %13 = vector.load %arg5[%c0_12, %c0_13] : memref<1x32xf32, #tpu.memory_space<vmem>>, vector<1x32xf32>
      %14 = vector.broadcast %13 : vector<1x32xf32> to vector<16x32xf32>
      %15 = arith.addf %12, %14 : vector<16x32xf32>
      %c0_14 = arith.constant 0 : index
      %c0_15 = arith.constant 0 : index
      %16 = vector.load %arg6[%c0_14, %c0_15] : memref<16x32xf32, #tpu.memory_space<vmem>>, vector<16x32xf32>
      tpu.vector_store %arg6[%c0_14, %c0_15], %15 {strides = array<i32>} : memref<16x32xf32, #tpu.memory_space<vmem>>, vector<16x32xf32>,
    } else {
    }
    return
  }
  func.func @transform_0(%arg0: i32, %arg1: i32, %arg2: i32) -> (i32, i32) {
    %c0_i32 = arith.constant 0 : i32
    return %arg0, %arg2 : i32, i32
  }
  func.func @transform_1(%arg0: i32, %arg1: i32, %arg2: i32) -> (i32, i32) {
    %c0_i32 = arith.constant 0 : i32
    return %arg1, %arg2 : i32, i32
  }
  func.func @transform_2(%arg0: i32, %arg1: i32, %arg2: i32) -> (i32, i32) {
    %c0_i32 = arith.constant 0 : i32
    %c0_i32_0 = arith.constant 0 : i32
    return %c0_i32, %arg1 : i32, i32
  }
  func.func @transform_3(%arg0: i32, %arg1: i32, %arg2: i32) -> (i32, i32) {
    %c0_i32 = arith.constant 0 : i32
    return %arg0, %arg1 : i32, i32
  }
}

module attributes {stable_mosaic.version = 11 : i64} {
  func.func @_linear_kernel(%arg0: i32, %arg1: i32, %arg2: i32, %arg3: memref<16x32xbf16, #tpu.memory_space<vmem>>, %arg4: memref<32x32xbf16, #tpu.memory_space<vmem>>, %arg5: memref<1x32xf32, #tpu.memory_space<vmem>>, %arg6: memref<16x32xbf16, #tpu.memory_space<vmem>>, %arg7: memref<16x32xf32, #tpu.memory_space<vmem>>) attributes {dimension_semantics = [#tpu.dimension_semantics<parallel>, #tpu.dimension_semantics<parallel>, #tpu.dimension_semantics<arbitrary>], iteration_bounds = array<i64: 1, 1, 1>, scalar_prefetch = 0 : i64, scratch_operands = 1 : i64, tpu.core_type = #tpu.core_type<tc>, window_params = [{transform_indices = @transform_0, window_bounds = array<i64: 16, 32>}, {transform_indices = @transform_1, window_bounds = array<i64: 32, 32>}, {transform_indices = @transform_2, window_bounds = array<i64: 1, 32>}, {transform_indices = @transform_3, window_bounds = array<i64: 16, 32>}]} {
    %c0_i32 = arith.constant 0 : i32
    %0 = arith.cmpi eq, %arg2, %c0_i32 : i32
    %1 = arith.extui %0 : i1 to i32
    %c0_i32_0 = arith.constant 0 : i32
    %2 = arith.cmpi ne, %1, %c0_i32_0 : i32
    scf.if %2 {
      %cst_10 = arith.constant 0.000000e+00 : f32
      %12 = vector.broadcast %cst_10 : f32 to vector<16x32xf32>
      %c0_11 = arith.constant 0 : index
      %c0_12 = arith.constant 0 : index
      %13 = vector.load %arg7[%c0_11, %c0_12] : memref<16x32xf32, #tpu.memory_space<vmem>>, vector<16x32xf32>
      tpu.vector_store %arg7[%c0_11, %c0_12], %12 {strides = array<i32>} : memref<16x32xf32, #tpu.memory_space<vmem>>, vector<16x32xf32>,
    } else {
    }
    %c0 = arith.constant 0 : index
    %c0_1 = arith.constant 0 : index
    %3 = vector.load %arg7[%c0, %c0_1] : memref<16x32xf32, #tpu.memory_space<vmem>>, vector<16x32xf32>
    %c0_2 = arith.constant 0 : index
    %c0_3 = arith.constant 0 : index
    %4 = vector.load %arg3[%c0_2, %c0_3] : memref<16x32xbf16, #tpu.memory_space<vmem>>, vector<16x32xbf16>
    %c0_4 = arith.constant 0 : index
    %c0_5 = arith.constant 0 : index
    %5 = vector.load %arg4[%c0_4, %c0_5] : memref<32x32xbf16, #tpu.memory_space<vmem>>, vector<32x32xbf16>
    %cst = arith.constant dense<0.000000e+00> : vector<16x32xf32>
    %6 = tpu.matmul %4, %5, %cst {dimension_numbers = #tpu.dot_dimension_numbers<[1], [1], [0], [0], [0, 0, 1, 0], [], []>} : vector<16x32xbf16>, vector<32x32xbf16>, vector<16x32xf32> -> vector<16x32xf32>
    %7 = arith.addf %3, %6 : vector<16x32xf32>
    %c0_6 = arith.constant 0 : index
    %c0_7 = arith.constant 0 : index
    %8 = vector.load %arg7[%c0_6, %c0_7] : memref<16x32xf32, #tpu.memory_space<vmem>>, vector<16x32xf32>
    tpu.vector_store %arg7[%c0_6, %c0_7], %7 {strides = array<i32>} : memref<16x32xf32, #tpu.memory_space<vmem>>, vector<16x32xf32>,
    %c0_i32_8 = arith.constant 0 : i32
    %9 = arith.cmpi eq, %arg2, %c0_i32_8 : i32
    %10 = arith.extui %9 : i1 to i32
    %c0_i32_9 = arith.constant 0 : i32
    %11 = arith.cmpi ne, %10, %c0_i32_9 : i32
    scf.if %11 {
      %c0_10 = arith.constant 0 : index
      %c0_11 = arith.constant 0 : index
      %12 = vector.load %arg7[%c0_10, %c0_11] : memref<16x32xf32, #tpu.memory_space<vmem>>, vector<16x32xf32>
      %c0_12 = arith.constant 0 : index
      %c0_13 = arith.constant 0 : index
      %13 = vector.load %arg5[%c0_12, %c0_13] : memref<1x32xf32, #tpu.memory_space<vmem>>, vector<1x32xf32>
      %14 = vector.broadcast %13 : vector<1x32xf32> to vector<16x32xf32>
      %15 = arith.addf %12, %14 : vector<16x32xf32>
      %16 = arith.truncf %15 : vector<16x32xf32> to vector<16x32xbf16>
      %c0_14 = arith.constant 0 : index
      %c0_15 = arith.constant 0 : index
      %17 = vector.load %arg6[%c0_14, %c0_15] : memref<16x32xbf16, #tpu.memory_space<vmem>>, vector<16x32xbf16>
      tpu.vector_store %arg6[%c0_14, %c0_15], %16 {strides = array<i32>} : memref<16x32xbf16, #tpu.memory_space<vmem>>, vector<16x32xbf16>,
    } else {
    }
    return
  }
  func.func @transform_0(%arg0: i32, %arg1: i32, %arg2: i32) -> (i32, i32) {
    %c0_i32 = arith.constant 0 : i32
    return %arg0, %arg2 : i32, i32
  }
  func.func @transform_1(%arg0: i32, %arg1: i32, %arg2: i32) -> (i32, i32) {
    %c0_i32 = arith.constant 0 : i32
    return %arg1, %arg2 : i32, i32
  }
  func.func @transform_2(%arg0: i32, %arg1: i32, %arg2: i32) -> (i32, i32) {
    %c0_i32 = arith.constant 0 : i32
    %c0_i32_0 = arith.constant 0 : i32
    return %c0_i32, %arg1 : i32, i32
  }
  func.func @transform_3(%arg0: i32, %arg1: i32, %arg2: i32) -> (i32, i32) {
    %c0_i32 = arith.constant 0 : i32
    return %arg0, %arg1 : i32, i32
  }
}

module attributes {stable_mosaic.version = 11 : i64} {
  func.func @_flash_attn_kernel(%arg0: i32, %arg1: i32, %arg2: i32, %arg3: memref<8x32xbf16, #tpu.memory_space<vmem>>, %arg4: memref<8x32xbf16, #tpu.memory_space<vmem>>, %arg5: memref<8x32xbf16, #tpu.memory_space<vmem>>, %arg6: memref<8x32xbf16, #tpu.memory_space<vmem>>, %arg7: memref<8x4xf32, #tpu.memory_space<vmem>>, %arg8: memref<8x4xf32, #tpu.memory_space<vmem>>, %arg9: memref<8x32xf32, #tpu.memory_space<vmem>>) attributes {dimension_semantics = [#tpu.dimension_semantics<parallel>, #tpu.dimension_semantics<parallel>, #tpu.dimension_semantics<arbitrary>], iteration_bounds = array<i64: 2, 1, 1>, scalar_prefetch = 0 : i64, scratch_operands = 3 : i64, tpu.core_type = #tpu.core_type<tc>, window_params = [{transform_indices = @transform_0, window_bounds = array<i64: 8, 32>}, {transform_indices = @transform_1, window_bounds = array<i64: 8, 32>}, {transform_indices = @transform_2, window_bounds = array<i64: 8, 32>}, {transform_indices = @transform_3, window_bounds = array<i64: 8, 32>}]} {
    %c0_i32 = arith.constant 0 : i32
    %0 = arith.cmpi eq, %arg2, %c0_i32 : i32
    %1 = arith.extui %0 : i1 to i32
    %c0_i32_0 = arith.constant 0 : i32
    %2 = arith.cmpi ne, %1, %c0_i32_0 : i32
    scf.if %2 {
      %cst = arith.constant -1.000000e+30 : f32
      %9 = vector.broadcast %cst : f32 to vector<8x4xf32>
      %c0 = arith.constant 0 : index
      %c0_3 = arith.constant 0 : index
      %10 = vector.load %arg7[%c0, %c0_3] : memref<8x4xf32, #tpu.memory_space<vmem>>, vector<8x4xf32>
      tpu.vector_store %arg7[%c0, %c0_3], %9 {strides = array<i32>} : memref<8x4xf32, #tpu.memory_space<vmem>>, vector<8x4xf32>,
      %cst_4 = arith.constant 0.000000e+00 : f32
      %11 = vector.broadcast %cst_4 : f32 to vector<8x4xf32>
      %c0_5 = arith.constant 0 : index
      %c0_6 = arith.constant 0 : index
      %12 = vector.load %arg8[%c0_5, %c0_6] : memref<8x4xf32, #tpu.memory_space<vmem>>, vector<8x4xf32>
      tpu.vector_store %arg8[%c0_5, %c0_6], %11 {strides = array<i32>} : memref<8x4xf32, #tpu.memory_space<vmem>>, vector<8x4xf32>,
      %cst_7 = arith.constant 0.000000e+00 : f32
      %13 = vector.broadcast %cst_7 : f32 to vector<8x32xf32>
      %c0_8 = arith.constant 0 : index
      %c0_9 = arith.constant 0 : index
      %14 = vector.load %arg9[%c0_8, %c0_9] : memref<8x32xf32, #tpu.memory_space<vmem>>, vector<8x32xf32>
      tpu.vector_store %arg9[%c0_8, %c0_9], %13 {strides = array<i32>} : memref<8x32xf32, #tpu.memory_space<vmem>>, vector<8x32xf32>,
    } else {
    }
    %3 = arith.cmpi sle, %arg2, %arg1 : i32
    %4 = arith.extui %3 : i1 to i32
    %c0_i32_1 = arith.constant 0 : i32
    %5 = arith.cmpi ne, %4, %c0_i32_1 : i32
    scf.if %5 {
      %c0 = arith.constant 0 : index
      %c0_3 = arith.constant 0 : index
      %9 = vector.load %arg3[%c0, %c0_3] : memref<8x32xbf16, #tpu.memory_space<vmem>>, vector<8x32xbf16>
      %cst = arith.constant 3.535160e-01 : bf16
      %10 = vector.broadcast %cst : bf16 to vector<8x32xbf16>
      %11 = arith.mulf %9, %10 : vector<8x32xbf16>
      %c0_4 = arith.constant 0 : index
      %c0_5 = arith.constant 0 : index
      %12 = vector.load %arg4[%c0_4, %c0_5] : memref<8x32xbf16, #tpu.memory_space<vmem>>, vector<8x32xbf16>
      %c0_6 = arith.constant 0 : index
      %c0_7 = arith.constant 0 : index
      %13 = vector.load %arg5[%c0_6, %c0_7] : memref<8x32xbf16, #tpu.memory_space<vmem>>, vector<8x32xbf16>
      %c8_i32 = arith.constant 8 : i32
      %14 = arith.muli %arg1, %c8_i32 : i32
      %15 = tpu.iota {dimensions = array<i32: 0>} : vector<8x8xi32>
      %16 = vector.broadcast %14 : i32 to vector<8x8xi32>
      %17 = arith.addi %16, %15 : vector<8x8xi32>
      %c8_i32_8 = arith.constant 8 : i32
      %18 = arith.muli %arg2, %c8_i32_8 : i32
      %19 = tpu.iota {dimensions = array<i32: 1>} : vector<8x8xi32>
      %20 = vector.broadcast %18 : i32 to vector<8x8xi32>
      %21 = arith.addi %20, %19 : vector<8x8xi32>
      %22 = arith.cmpi sge, %17, %21 : vector<8x8xi32>
      %23 = vector.extract_strided_slice %11 {offsets = [0, 0], sizes = [8, 8], strides = [1, 1]} : vector<8x32xbf16> to vector<8x8xbf16>
      %24 = vector.extract_strided_slice %12 {offsets = [0, 0], sizes = [8, 8], strides = [1, 1]} : vector<8x32xbf16> to vector<8x8xbf16>
      %cst_9 = arith.constant dense<0.000000e+00> : vector<8x8xf32>
      %25 = tpu.matmul %23, %24, %cst_9 {dimension_numbers = #tpu.dot_dimension_numbers<[1], [1], [0], [0], [0, 0, 1, 0], [], []>} : vector<8x8xbf16>, vector<8x8xbf16>, vector<8x8xf32> -> vector<8x8xf32>
      %cst_10 = arith.constant -1.000000e+30 : f32
      %26 = vector.broadcast %cst_10 : f32 to vector<8x8xf32>
      %27 = arith.select %22, %25, %26 : vector<8x8xi1>, vector<8x8xf32>
      %c0_11 = arith.constant 0 : index
      %c0_12 = arith.constant 0 : index
      %28 = vector.load %arg7[%c0_11, %c0_12] : memref<8x4xf32, #tpu.memory_space<vmem>>, vector<8x1xf32>
      %cst_13 = arith.constant dense<0xFF800000> : vector<8xf32>
      %29 = vector.multi_reduction <maximumf>, %27, %cst_13 [1] : vector<8x8xf32> to vector<8xf32>
      %30 = vector.shape_cast %29 : vector<8xf32> to vector<8x1xf32>
      %31 = arith.maximumf %28, %30 : vector<8x1xf32>
      %32 = arith.subf %28, %31 : vector<8x1xf32>
      %33 = math.exp %32 : vector<8x1xf32>
      %34 = vector.broadcast %31 : vector<8x1xf32> to vector<8x8xf32>
      %35 = arith.subf %27, %34 : vector<8x8xf32>
      %36 = math.exp %35 : vector<8x8xf32>
      %c0_14 = arith.constant 0 : index
      %c0_15 = arith.constant 0 : index
      %37 = vector.load %arg8[%c0_14, %c0_15] : memref<8x4xf32, #tpu.memory_space<vmem>>, vector<8x1xf32>
      %38 = arith.mulf %33, %37 : vector<8x1xf32>
      %cst_16 = arith.constant dense<0.000000e+00> : vector<8xf32>
      %39 = vector.multi_reduction <add>, %36, %cst_16 [1] : vector<8x8xf32> to vector<8xf32>
      %40 = vector.shape_cast %39 : vector<8xf32> to vector<8x1xf32>
      %41 = arith.addf %38, %40 : vector<8x1xf32>
      %c0_17 = arith.constant 0 : index
      %c0_18 = arith.constant 0 : index
      %42 = vector.load %arg8[%c0_17, %c0_18] : memref<8x4xf32, #tpu.memory_space<vmem>>, vector<8x1xf32>
      tpu.vector_store %arg8[%c0_17, %c0_18], %41 {strides = array<i32>} : memref<8x4xf32, #tpu.memory_space<vmem>>, vector<8x1xf32>,
      %c0_19 = arith.constant 0 : index
      %c0_20 = arith.constant 0 : index
      %43 = vector.load %arg9[%c0_19, %c0_20] : memref<8x32xf32, #tpu.memory_space<vmem>>, vector<8x8xf32>
      %44 = vector.broadcast %33 : vector<8x1xf32> to vector<8x8xf32>
      %45 = arith.mulf %44, %43 : vector<8x8xf32>
      %46 = arith.truncf %36 : vector<8x8xf32> to vector<8x8xbf16>
      %47 = vector.extract_strided_slice %13 {offsets = [0, 0], sizes = [8, 8], strides = [1, 1]} : vector<8x32xbf16> to vector<8x8xbf16>
      %cst_21 = arith.constant dense<0.000000e+00> : vector<8x8xf32>
      %48 = tpu.matmul %46, %47, %cst_21 {dimension_numbers = #tpu.dot_dimension_numbers<[1], [0], [0], [1], [0, 0, 1, 1], [], []>} : vector<8x8xbf16>, vector<8x8xbf16>, vector<8x8xf32> -> vector<8x8xf32>
      %49 = arith.addf %45, %48 : vector<8x8xf32>
      %c0_22 = arith.constant 0 : index
      %c0_23 = arith.constant 0 : index
      %50 = vector.load %arg9[%c0_22, %c0_23] : memref<8x32xf32, #tpu.memory_space<vmem>>, vector<8x8xf32>
      tpu.vector_store %arg9[%c0_22, %c0_23], %49 {strides = array<i32>} : memref<8x32xf32, #tpu.memory_space<vmem>>, vector<8x8xf32>,
      %c0_24 = arith.constant 0 : index
      %c0_25 = arith.constant 0 : index
      %51 = vector.load %arg7[%c0_24, %c0_25] : memref<8x4xf32, #tpu.memory_space<vmem>>, vector<8x1xf32>
      tpu.vector_store %arg7[%c0_24, %c0_25], %31 {strides = array<i32>} : memref<8x4xf32, #tpu.memory_space<vmem>>, vector<8x1xf32>,
      %52 = vector.extract_strided_slice %11 {offsets = [0, 8], sizes = [8, 8], strides = [1, 1]} : vector<8x32xbf16> to vector<8x8xbf16>
      %53 = vector.extract_strided_slice %12 {offsets = [0, 8], sizes = [8, 8], strides = [1, 1]} : vector<8x32xbf16> to vector<8x8xbf16>
      %cst_26 = arith.constant dense<0.000000e+00> : vector<8x8xf32>
      %54 = tpu.matmul %52, %53, %cst_26 {dimension_numbers = #tpu.dot_dimension_numbers<[1], [1], [0], [0], [0, 0, 1, 0], [], []>} : vector<8x8xbf16>, vector<8x8xbf16>, vector<8x8xf32> -> vector<8x8xf32>
      %cst_27 = arith.constant -1.000000e+30 : f32
      %55 = vector.broadcast %cst_27 : f32 to vector<8x8xf32>
      %56 = arith.select %22, %54, %55 : vector<8x8xi1>, vector<8x8xf32>
      %c0_28 = arith.constant 0 : index
      %c1 = arith.constant 1 : index
      %57 = vector.load %arg7[%c0_28, %c1] : memref<8x4xf32, #tpu.memory_space<vmem>>, vector<8x1xf32>
      %cst_29 = arith.constant dense<0xFF800000> : vector<8xf32>
      %58 = vector.multi_reduction <maximumf>, %56, %cst_29 [1] : vector<8x8xf32> to vector<8xf32>
      %59 = vector.shape_cast %58 : vector<8xf32> to vector<8x1xf32>
      %60 = arith.maximumf %57, %59 : vector<8x1xf32>
      %61 = arith.subf %57, %60 : vector<8x1xf32>
      %62 = math.exp %61 : vector<8x1xf32>
      %63 = vector.broadcast %60 : vector<8x1xf32> to vector<8x8xf32>
      %64 = arith.subf %56, %63 : vector<8x8xf32>
      %65 = math.exp %64 : vector<8x8xf32>
      %c0_30 = arith.constant 0 : index
      %c1_31 = arith.constant 1 : index
      %66 = vector.load %arg8[%c0_30, %c1_31] : memref<8x4xf32, #tpu.memory_space<vmem>>, vector<8x1xf32>
      %67 = arith.mulf %62, %66 : vector<8x1xf32>
      %cst_32 = arith.constant dense<0.000000e+00> : vector<8xf32>
      %68 = vector.multi_reduction <add>, %65, %cst_32 [1] : vector<8x8xf32> to vector<8xf32>
      %69 = vector.shape_cast %68 : vector<8xf32> to vector<8x1xf32>
      %70 = arith.addf %67, %69 : vector<8x1xf32>
      %c0_33 = arith.constant 0 : index
      %c1_34 = arith.constant 1 : index
      %71 = vector.load %arg8[%c0_33, %c1_34] : memref<8x4xf32, #tpu.memory_space<vmem>>, vector<8x1xf32>
      tpu.vector_store %arg8[%c0_33, %c1_34], %70 {strides = array<i32>} : memref<8x4xf32, #tpu.memory_space<vmem>>, vector<8x1xf32>,
      %c0_35 = arith.constant 0 : index
      %c8 = arith.constant 8 : index
      %72 = vector.load %arg9[%c0_35, %c8] : memref<8x32xf32, #tpu.memory_space<vmem>>, vector<8x8xf32>
      %73 = vector.broadcast %62 : vector<8x1xf32> to vector<8x8xf32>
      %74 = arith.mulf %73, %72 : vector<8x8xf32>
      %75 = arith.truncf %65 : vector<8x8xf32> to vector<8x8xbf16>
      %76 = vector.extract_strided_slice %13 {offsets = [0, 8], sizes = [8, 8], strides = [1, 1]} : vector<8x32xbf16> to vector<8x8xbf16>
      %cst_36 = arith.constant dense<0.000000e+00> : vector<8x8xf32>
      %77 = tpu.matmul %75, %76, %cst_36 {dimension_numbers = #tpu.dot_dimension_numbers<[1], [0], [0], [1], [0, 0, 1, 1], [], []>} : vector<8x8xbf16>, vector<8x8xbf16>, vector<8x8xf32> -> vector<8x8xf32>
      %78 = arith.addf %74, %77 : vector<8x8xf32>
      %c0_37 = arith.constant 0 : index
      %c8_38 = arith.constant 8 : index
      %79 = vector.load %arg9[%c0_37, %c8_38] : memref<8x32xf32, #tpu.memory_space<vmem>>, vector<8x8xf32>
      tpu.vector_store %arg9[%c0_37, %c8_38], %78 {strides = array<i32>} : memref<8x32xf32, #tpu.memory_space<vmem>>, vector<8x8xf32>,
      %c0_39 = arith.constant 0 : index
      %c1_40 = arith.constant 1 : index
      %80 = vector.load %arg7[%c0_39, %c1_40] : memref<8x4xf32, #tpu.memory_space<vmem>>, vector<8x1xf32>
      tpu.vector_store %arg7[%c0_39, %c1_40], %60 {strides = array<i32>} : memref<8x4xf32, #tpu.memory_space<vmem>>, vector<8x1xf32>,
      %81 = vector.extract_strided_slice %11 {offsets = [0, 16], sizes = [8, 8], strides = [1, 1]} : vector<8x32xbf16> to vector<8x8xbf16>
      %82 = vector.extract_strided_slice %12 {offsets = [0, 16], sizes = [8, 8], strides = [1, 1]} : vector<8x32xbf16> to vector<8x8xbf16>
      %cst_41 = arith.constant dense<0.000000e+00> : vector<8x8xf32>
      %83 = tpu.matmul %81, %82, %cst_41 {dimension_numbers = #tpu.dot_dimension_numbers<[1], [1], [0], [0], [0, 0, 1, 0], [], []>} : vector<8x8xbf16>, vector<8x8xbf16>, vector<8x8xf32> -> vector<8x8xf32>
      %cst_42 = arith.constant -1.000000e+30 : f32
      %84 = vector.broadcast %cst_42 : f32 to vector<8x8xf32>
      %85 = arith.select %22, %83, %84 : vector<8x8xi1>, vector<8x8xf32>
      %c0_43 = arith.constant 0 : index
      %c2 = arith.constant 2 : index
      %86 = vector.load %arg7[%c0_43, %c2] : memref<8x4xf32, #tpu.memory_space<vmem>>, vector<8x1xf32>
      %cst_44 = arith.constant dense<0xFF800000> : vector<8xf32>
      %87 = vector.multi_reduction <maximumf>, %85, %cst_44 [1] : vector<8x8xf32> to vector<8xf32>
      %88 = vector.shape_cast %87 : vector<8xf32> to vector<8x1xf32>
      %89 = arith.maximumf %86, %88 : vector<8x1xf32>
      %90 = arith.subf %86, %89 : vector<8x1xf32>
      %91 = math.exp %90 : vector<8x1xf32>
      %92 = vector.broadcast %89 : vector<8x1xf32> to vector<8x8xf32>
      %93 = arith.subf %85, %92 : vector<8x8xf32>
      %94 = math.exp %93 : vector<8x8xf32>
      %c0_45 = arith.constant 0 : index
      %c2_46 = arith.constant 2 : index
      %95 = vector.load %arg8[%c0_45, %c2_46] : memref<8x4xf32, #tpu.memory_space<vmem>>, vector<8x1xf32>
      %96 = arith.mulf %91, %95 : vector<8x1xf32>
      %cst_47 = arith.constant dense<0.000000e+00> : vector<8xf32>
      %97 = vector.multi_reduction <add>, %94, %cst_47 [1] : vector<8x8xf32> to vector<8xf32>
      %98 = vector.shape_cast %97 : vector<8xf32> to vector<8x1xf32>
      %99 = arith.addf %96, %98 : vector<8x1xf32>
      %c0_48 = arith.constant 0 : index
      %c2_49 = arith.constant 2 : index
      %100 = vector.load %arg8[%c0_48, %c2_49] : memref<8x4xf32, #tpu.memory_space<vmem>>, vector<8x1xf32>
      tpu.vector_store %arg8[%c0_48, %c2_49], %99 {strides = array<i32>} : memref<8x4xf32, #tpu.memory_space<vmem>>, vector<8x1xf32>,
      %c0_50 = arith.constant 0 : index
      %c16 = arith.constant 16 : index
      %101 = vector.load %arg9[%c0_50, %c16] : memref<8x32xf32, #tpu.memory_space<vmem>>, vector<8x8xf32>
      %102 = vector.broadcast %91 : vector<8x1xf32> to vector<8x8xf32>
      %103 = arith.mulf %102, %101 : vector<8x8xf32>
      %104 = arith.truncf %94 : vector<8x8xf32> to vector<8x8xbf16>
      %105 = vector.extract_strided_slice %13 {offsets = [0, 16], sizes = [8, 8], strides = [1, 1]} : vector<8x32xbf16> to vector<8x8xbf16>
      %cst_51 = arith.constant dense<0.000000e+00> : vector<8x8xf32>
      %106 = tpu.matmul %104, %105, %cst_51 {dimension_numbers = #tpu.dot_dimension_numbers<[1], [0], [0], [1], [0, 0, 1, 1], [], []>} : vector<8x8xbf16>, vector<8x8xbf16>, vector<8x8xf32> -> vector<8x8xf32>
      %107 = arith.addf %103, %106 : vector<8x8xf32>
      %c0_52 = arith.constant 0 : index
      %c16_53 = arith.constant 16 : index
      %108 = vector.load %arg9[%c0_52, %c16_53] : memref<8x32xf32, #tpu.memory_space<vmem>>, vector<8x8xf32>
      tpu.vector_store %arg9[%c0_52, %c16_53], %107 {strides = array<i32>} : memref<8x32xf32, #tpu.memory_space<vmem>>, vector<8x8xf32>,
      %c0_54 = arith.constant 0 : index
      %c2_55 = arith.constant 2 : index
      %109 = vector.load %arg7[%c0_54, %c2_55] : memref<8x4xf32, #tpu.memory_space<vmem>>, vector<8x1xf32>
      tpu.vector_store %arg7[%c0_54, %c2_55], %89 {strides = array<i32>} : memref<8x4xf32, #tpu.memory_space<vmem>>, vector<8x1xf32>,
      %110 = vector.extract_strided_slice %11 {offsets = [0, 24], sizes = [8, 8], strides = [1, 1]} : vector<8x32xbf16> to vector<8x8xbf16>
      %111 = vector.extract_strided_slice %12 {offsets = [0, 24], sizes = [8, 8], strides = [1, 1]} : vector<8x32xbf16> to vector<8x8xbf16>
      %cst_56 = arith.constant dense<0.000000e+00> : vector<8x8xf32>
      %112 = tpu.matmul %110, %111, %cst_56 {dimension_numbers = #tpu.dot_dimension_numbers<[1], [1], [0], [0], [0, 0, 1, 0], [], []>} : vector<8x8xbf16>, vector<8x8xbf16>, vector<8x8xf32> -> vector<8x8xf32>
      %cst_57 = arith.constant -1.000000e+30 : f32
      %113 = vector.broadcast %cst_57 : f32 to vector<8x8xf32>
      %114 = arith.select %22, %112, %113 : vector<8x8xi1>, vector<8x8xf32>
      %c0_58 = arith.constant 0 : index
      %c3 = arith.constant 3 : index
      %115 = vector.load %arg7[%c0_58, %c3] : memref<8x4xf32, #tpu.memory_space<vmem>>, vector<8x1xf32>
      %cst_59 = arith.constant dense<0xFF800000> : vector<8xf32>
      %116 = vector.multi_reduction <maximumf>, %114, %cst_59 [1] : vector<8x8xf32> to vector<8xf32>
      %117 = vector.shape_cast %116 : vector<8xf32> to vector<8x1xf32>
      %118 = arith.maximumf %115, %117 : vector<8x1xf32>
      %119 = arith.subf %115, %118 : vector<8x1xf32>
      %120 = math.exp %119 : vector<8x1xf32>
      %121 = vector.broadcast %118 : vector<8x1xf32> to vector<8x8xf32>
      %122 = arith.subf %114, %121 : vector<8x8xf32>
      %123 = math.exp %122 : vector<8x8xf32>
      %c0_60 = arith.constant 0 : index
      %c3_61 = arith.constant 3 : index
      %124 = vector.load %arg8[%c0_60, %c3_61] : memref<8x4xf32, #tpu.memory_space<vmem>>, vector<8x1xf32>
      %125 = arith.mulf %120, %124 : vector<8x1xf32>
      %cst_62 = arith.constant dense<0.000000e+00> : vector<8xf32>
      %126 = vector.multi_reduction <add>, %123, %cst_62 [1] : vector<8x8xf32> to vector<8xf32>
      %127 = vector.shape_cast %126 : vector<8xf32> to vector<8x1xf32>
      %128 = arith.addf %125, %127 : vector<8x1xf32>
      %c0_63 = arith.constant 0 : index
      %c3_64 = arith.constant 3 : index
      %129 = vector.load %arg8[%c0_63, %c3_64] : memref<8x4xf32, #tpu.memory_space<vmem>>, vector<8x1xf32>
      tpu.vector_store %arg8[%c0_63, %c3_64], %128 {strides = array<i32>} : memref<8x4xf32, #tpu.memory_space<vmem>>, vector<8x1xf32>,
      %c0_65 = arith.constant 0 : index
      %c24 = arith.constant 24 : index
      %130 = vector.load %arg9[%c0_65, %c24] : memref<8x32xf32, #tpu.memory_space<vmem>>, vector<8x8xf32>
      %131 = vector.broadcast %120 : vector<8x1xf32> to vector<8x8xf32>
      %132 = arith.mulf %131, %130 : vector<8x8xf32>
      %133 = arith.truncf %123 : vector<8x8xf32> to vector<8x8xbf16>
      %134 = vector.extract_strided_slice %13 {offsets = [0, 24], sizes = [8, 8], strides = [1, 1]} : vector<8x32xbf16> to vector<8x8xbf16>
      %cst_66 = arith.constant dense<0.000000e+00> : vector<8x8xf32>
      %135 = tpu.matmul %133, %134, %cst_66 {dimension_numbers = #tpu.dot_dimension_numbers<[1], [0], [0], [1], [0, 0, 1, 1], [], []>} : vector<8x8xbf16>, vector<8x8xbf16>, vector<8x8xf32> -> vector<8x8xf32>
      %136 = arith.addf %132, %135 : vector<8x8xf32>
      %c0_67 = arith.constant 0 : index
      %c24_68 = arith.constant 24 : index
      %137 = vector.load %arg9[%c0_67, %c24_68] : memref<8x32xf32, #tpu.memory_space<vmem>>, vector<8x8xf32>
      tpu.vector_store %arg9[%c0_67, %c24_68], %136 {strides = array<i32>} : memref<8x32xf32, #tpu.memory_space<vmem>>, vector<8x8xf32>,
      %c0_69 = arith.constant 0 : index
      %c3_70 = arith.constant 3 : index
      %138 = vector.load %arg7[%c0_69, %c3_70] : memref<8x4xf32, #tpu.memory_space<vmem>>, vector<8x1xf32>
      tpu.vector_store %arg7[%c0_69, %c3_70], %118 {strides = array<i32>} : memref<8x4xf32, #tpu.memory_space<vmem>>, vector<8x1xf32>,
    } else {
    }
    %6 = arith.cmpi eq, %arg2, %arg1 : i32
    %7 = arith.extui %6 : i1 to i32
    %c0_i32_2 = arith.constant 0 : i32
    %8 = arith.cmpi ne, %7, %c0_i32_2 : i32
    scf.if %8 {
      %c0 = arith.constant 0 : index
      %c0_3 = arith.constant 0 : index
      %9 = vector.load %arg8[%c0, %c0_3] : memref<8x4xf32, #tpu.memory_space<vmem>>, vector<8x1xf32>
      %10 = tpu.reciprocal %9 {approx = true} : vector<8x1xf32> -> vector<8x1xf32>
      %c0_4 = arith.constant 0 : index
      %c0_5 = arith.constant 0 : index
      %11 = vector.load %arg9[%c0_4, %c0_5] : memref<8x32xf32, #tpu.memory_space<vmem>>, vector<8x8xf32>
      %12 = vector.broadcast %10 : vector<8x1xf32> to vector<8x8xf32>
      %13 = arith.mulf %11, %12 : vector<8x8xf32>
      %c0_6 = arith.constant 0 : index
      %c1 = arith.constant 1 : index
      %14 = vector.load %arg8[%c0_6, %c1] : memref<8x4xf32, #tpu.memory_space<vmem>>, vector<8x1xf32>
      %15 = tpu.reciprocal %14 {approx = true} : vector<8x1xf32> -> vector<8x1xf32>
      %c0_7 = arith.constant 0 : index
      %c8 = arith.constant 8 : index
      %16 = vector.load %arg9[%c0_7, %c8] : memref<8x32xf32, #tpu.memory_space<vmem>>, vector<8x8xf32>
      %17 = vector.broadcast %15 : vector<8x1xf32> to vector<8x8xf32>
      %18 = arith.mulf %16, %17 : vector<8x8xf32>
      %c0_8 = arith.constant 0 : index
      %c2 = arith.constant 2 : index
      %19 = vector.load %arg8[%c0_8, %c2] : memref<8x4xf32, #tpu.memory_space<vmem>>, vector<8x1xf32>
      %20 = tpu.reciprocal %19 {approx = true} : vector<8x1xf32> -> vector<8x1xf32>
      %c0_9 = arith.constant 0 : index
      %c16 = arith.constant 16 : index
      %21 = vector.load %arg9[%c0_9, %c16] : memref<8x32xf32, #tpu.memory_space<vmem>>, vector<8x8xf32>
      %22 = vector.broadcast %20 : vector<8x1xf32> to vector<8x8xf32>
      %23 = arith.mulf %21, %22 : vector<8x8xf32>
      %c0_10 = arith.constant 0 : index
      %c3 = arith.constant 3 : index
      %24 = vector.load %arg8[%c0_10, %c3] : memref<8x4xf32, #tpu.memory_space<vmem>>, vector<8x1xf32>
      %25 = tpu.reciprocal %24 {approx = true} : vector<8x1xf32> -> vector<8x1xf32>
      %c0_11 = arith.constant 0 : index
      %c24 = arith.constant 24 : index
      %26 = vector.load %arg9[%c0_11, %c24] : memref<8x32xf32, #tpu.memory_space<vmem>>, vector<8x8xf32>
      %27 = vector.broadcast %25 : vector<8x1xf32> to vector<8x8xf32>
      %28 = arith.mulf %26, %27 : vector<8x8xf32>
      %29 = tpu.concatenate %13, %18, %23, %28 in 1 : vector<8x8xf32>, vector<8x8xf32>, vector<8x8xf32>, vector<8x8xf32> -> vector<8x32xf32>
      %30 = arith.truncf %29 : vector<8x32xf32> to vector<8x32xbf16>
      %c0_12 = arith.constant 0 : index
      %c0_13 = arith.constant 0 : index
      %31 = vector.load %arg6[%c0_12, %c0_13] : memref<8x32xbf16, #tpu.memory_space<vmem>>, vector<8x32xbf16>
      tpu.vector_store %arg6[%c0_12, %c0_13], %30 {strides = array<i32>} : memref<8x32xbf16, #tpu.memory_space<vmem>>, vector<8x32xbf16>,
    } else {
    }
    return
  }
  func.func @transform_0(%arg0: i32, %arg1: i32, %arg2: i32) -> (i32, i32) {
    %c1_i32 = arith.constant 1 : i32
    %0 = arith.muli %arg0, %c1_i32 : i32
    %1 = arith.addi %0, %arg1 : i32
    %c0_i32 = arith.constant 0 : i32
    %c0_i32_0 = arith.constant 0 : i32
    return %1, %c0_i32 : i32, i32
  }
  func.func @transform_1(%arg0: i32, %arg1: i32, %arg2: i32) -> (i32, i32) {
    %c1_i32 = arith.constant 1 : i32
    %0 = arith.muli %arg0, %c1_i32 : i32
    %1 = arith.addi %0, %arg2 : i32
    %c0_i32 = arith.constant 0 : i32
    %c0_i32_0 = arith.constant 0 : i32
    return %1, %c0_i32 : i32, i32
  }
  func.func @transform_2(%arg0: i32, %arg1: i32, %arg2: i32) -> (i32, i32) {
    %c1_i32 = arith.constant 1 : i32
    %0 = arith.muli %arg0, %c1_i32 : i32
    %1 = arith.addi %0, %arg2 : i32
    %c0_i32 = arith.constant 0 : i32
    %c0_i32_0 = arith.constant 0 : i32
    return %1, %c0_i32 : i32, i32
  }
  func.func @transform_3(%arg0: i32, %arg1: i32, %arg2: i32) -> (i32, i32) {
    %c1_i32 = arith.constant 1 : i32
    %0 = arith.muli %arg0, %c1_i32 : i32
    %1 = arith.addi %0, %arg1 : i32
    %c0_i32 = arith.constant 0 : i32
    %c0_i32_0 = arith.constant 0 : i32
    return %1, %c0_i32 : i32, i32
  }
}

</mosaic_0001>

<bundles_post_ra>
// kernel: causal_self_attention.4
= control target key start
LH: loop header
LB: loop body
LE: loop exit
PB: predicated region body
PF: predicated region fallthrough
CT: control target
= control target key end

     0   :  { %vm19_vm0 = vcmask 261120   ;;  %v154_v0 = vmov 0.0   ;;  %vm155_vm1 = vmmov 0   ;;  %vm122_vm2 = vcmask 257024   ;;  %s201_s1 = inlined_call_operand.vmem [shape: bf16[32,32], index: 1, kind: input, shape index: {}]   ;;  %s202_s0 = inlined_call_operand.vmem [shape: bf16[16,32], index: 0, kind: input, shape index: {}]   ;;  %s203_s2 = inlined_call_operand.vmem [shape: f32[1,32], index: 2, kind: input, shape index: {}]   ;;  %s204_s3 = inlined_call_operand.vmem [shape: bf16[16,32], index: 3, kind: output, shape index: {}]  }
   0x1   :  { %141 = vmatprep.subr.bf16.mxu0 %v154_v0  ;;  %v151_v1 = vld [vmem:[%s201_s1] sm:$0xff]   ;;  %20 = vst.msk [vmem:[#allocation2] sm:$0xff] %vm19_vm0, %v154_v0  ;;  %21 = vst.msk [vmem:[#allocation2 + $0x8] sm:$0xff] %vm19_vm0, %v154_v0  ;;  %145 = vmatprep.mubr.msk.bf16.mxu0 %vm155_vm1, %v154_v0  ;;  %v152_v3 = vld [vmem:[%s201_s1 + $0x8] sm:$0xff]  }
   0x2   :  { %v50_v2 = vsel %vm19_vm0, %v151_v1, 0  ;;  %v53_v4 = vsel %vm19_vm0, %v152_v3, 0  ;;  %v153_v5 = vld [vmem:[%s202_s0] sm:$0xff]  }
   0x3   :  { %142 = vmatpush3.bf16.xpose.msra.mxu0 %v50_v2  ;;  %v133_v14 = vld [vmem:[%s203_s2] ss:$0 sm:$0xff] }
   0x4   :  { %143 = vmatprep.subr.bf16.mxu0 %v154_v0 }
   0x8   :  { %v22_v6 = vld [vmem:[#allocation2] sm:$0xff]  ;;  %v23_v8 = vld [vmem:[#allocation2 + $0x8] sm:$0xff] }
   0xb   :  { %144 = vmatpush3.bf16.xpose.msra.mxu0 %v53_v4 }
  0x12   :  { %146 = vmatmul.mubr.msk.bf16.vlgmr.msra.gmra.mrb[0].mxu0 %vm19_vm0, %v153_v5 }
  0xe5   :  { %v89_v7 = vpop.f32.mrb[0].mxu0 }
  0xe6   :  { %v96_v9 = vadd.f32 %v89_v7, %v22_v6  ;;  %v147_v10 = vpop.f32.mrb[1].mxu0 }
  0xe7   :  { %v92_v11 = vpop.f32.mrb[2].mxu0 }
  0xe8   :  { %98 = vst.msk [vmem:[#allocation2] sm:$0xff] %vm19_vm0, %v96_v9  ;;  %v97_v12 = vadd.f32 %v92_v11, %v23_v8  ;;  %v148_v13 = vpop.f32.mrb[3].mxu0 }
  0xea   :  { %99 = vst.msk [vmem:[#allocation2 + $0x8] sm:$0xff] %vm19_vm0, %v97_v12 }
  0xef   :  { %v103_v15 = vld [vmem:[#allocation2] sm:$0xff] }
  0xf0   :  { %v112_v16 = vadd.f32 %v133_v14, %v103_v15 }
  0xf1   :  { %v104_v17 = vld [vmem:[#allocation2 + $0x8] sm:$0xff] }
  0xf2   :  { %v136_v18 = vpack.c.bf16 %v112_v16, %v112_v16  ;;  %v113_v19 = vadd.f32 %v133_v14, %v104_v17 }
  0xf4   :  { %123 = vst.msk [vmem:[%s204_s3] sm:$0xf] %vm122_vm2, %v136_v18  ;;  %v137_v20 = vpack.c.bf16 %v113_v19, %v113_v19 }
  0xf6   :  { %124 = vst.msk [vmem:[%s204_s3 + $0x4] sm:$0xf] %vm122_vm2, %v137_v20 }

// kernel: causal_self_attention.7
= control target key start
LH: loop header
LB: loop body
LE: loop exit
PB: predicated region body
PF: predicated region fallthrough
CT: control target
= control target key end

     0   :  { %vm20_vm0 = vcmask 261120   ;;  %v181_v0 = vmov 0.0   ;;  %vm182_vm1 = vmmov 0   ;;  %s239_s0 = inlined_call_operand.vmem [shape: bf16[16,32], index: 0, kind: input, shape index: {}]   ;;  %s240_s1 = inlined_call_operand.vmem [shape: bf16[32,32], index: 1, kind: input, shape index: {}]   ;;  %s241_s2 = inlined_call_operand.vmem [shape: f32[1,32], index: 2, kind: input, shape index: {}]   ;;  %s242_s3 = inlined_call_operand.hbm [shape: f32[16,32], index: 3, kind: output, shape index: {}]  }
   0x1   :  { %141 = vmatprep.subr.bf16.mxu0 %v181_v0  ;;  %v154_v1 = vld [vmem:[%s240_s1] sm:$0xff]   ;;  %21 = vst.msk [vmem:[#allocation2] sm:$0xff] %vm20_vm0, %v181_v0  ;;  %22 = vst.msk [vmem:[#allocation2 + $0x8] sm:$0xff] %vm20_vm0, %v181_v0  ;;  %145 = vmatprep.mubr.msk.bf16.mxu0 %vm182_vm1, %v181_v0 }
   0x2   :  { %v51_v2 = vsel %vm20_vm0, %v154_v1, 0 }
   0x3   :  { %8 = vsyncpa [#allocation4], 0  ;;  %142 = vmatpush3.bf16.xpose.msra.mxu0 %v51_v2  ;;  %v155_v3 = vld [vmem:[%s240_s1 + $0x8] sm:$0xff]   ;;  %v156_v5 = vld [vmem:[%s239_s0] sm:$0xff]   ;;  %s183_s19 = smov [#allocation3]  }
   0x4   :  { %143 = vmatprep.subr.bf16.mxu0 %v181_v0  ;;  %v54_v4 = vsel %vm20_vm0, %v155_v3, 0  ;;  %v137_v14 = vld [vmem:[%s241_s2] ss:$0 sm:$0xff]  ;;  %s122_s0 = sshll.u32 %s183_s19, 4  ;;  %s123_s0 = int_to_ptr.vmem [resolvable:$true] %s122_s0 }
   0x5   :  { %s157_s20 = scalar_lea.vmem %s123_s0, 256  ;;  %p162_p1 = scmp.lt.s32.totalorder %s123_s0, %s123_s0 }
   0x6   :  { %p158_p0 = scmp.ne.s32.totalorder %s123_s0, %s157_s20  ;;  %p163_p2 = scmp.lt.s32.totalorder %s157_s20, %s157_s20 }
   0x8   :  { %v23_v6 = vld [vmem:[#allocation2] sm:$0xff]  ;;  %v24_v8 = vld [vmem:[#allocation2 + $0x8] sm:$0xff]  ;;  %p164_p3 = por %p163_p2, %p162_p1 }
   0xa   :  { %p165_p4 = pnand %p164_p3, %p158_p0 }
   0xb   :  { %144 = vmatpush3.bf16.xpose.msra.mxu0 %v54_v4 }
  0x12   :  { %146 = vmatmul.mubr.msk.bf16.vlgmr.msra.gmra.mrb[0].mxu0 %vm20_vm0, %v156_v5 }
  0xe5   :  { %v90_v7 = vpop.f32.mrb[0].mxu0 }
  0xe6   :  { %v97_v9 = vadd.f32 %v90_v7, %v23_v6  ;;  %v147_v10 = vpop.f32.mrb[1].mxu0 }
  0xe7   :  { %v93_v11 = vpop.f32.mrb[2].mxu0 }
  0xe8   :  { %99 = vst.msk [vmem:[#allocation2] sm:$0xff] %vm20_vm0, %v97_v9  ;;  %v98_v12 = vadd.f32 %v93_v11, %v24_v8  ;;  %v148_v13 = vpop.f32.mrb[3].mxu0 }
  0xea   :  { %100 = vst.msk [vmem:[#allocation2 + $0x8] sm:$0xff] %vm20_vm0, %v98_v12 }
  0xef   :  { %v104_v15 = vld [vmem:[#allocation2] sm:$0xff] }
  0xf0   :  { %v113_v16 = vadd.f32 %v137_v14, %v104_v15 }
  0xf1   :  { %v105_v17 = vld [vmem:[#allocation2 + $0x8] sm:$0xff] }
  0xf2   :  { %v114_v18 = vadd.f32 %v137_v14, %v105_v17  ;;  %115 = vst.msk [vmem:[#allocation3] sm:$0xff] %vm20_vm0, %v113_v16 }
  0xf4   :  { %116 = vst.msk [vmem:[#allocation3 + $0x8] sm:$0xff] %vm20_vm0, %v114_v18 }
  0xf5   :  { %168 = shalt.err (!%p165_p4)
}
  0xf6   :  { %s169_s22 = scalar_lea.hbm %s242_s3, 256 }
  0xf7   :  { %p170_p5 = scmp.ne.s32.totalorder %s242_s3, %s169_s22  ;;  %p173_p6 = scmp.lt.u32.totalorder %s169_s22, %s242_s3 }
  0xf9   :  { %p175_p7 = pnand %p173_p6, %p170_p5 }
  0xfb   :  { %178 = shalt.err (!%p175_p7)
}
  0xfc   :  { %s184_s27 = smov 128   ;;  %s185_s28 = smov 8  }
  0xfd   :  { %128 = dma.vmem_to_hbm [thread:$0]  %s123_s0, 256, %s242_s3, [#allocation4], %s184_s27, %s184_s27, %s185_s28  }
  0xfe   :  { %179 = dma.done.wait [#allocation4], 256  }
  0xff   :  { %180 = vsyncadd [#allocation4], 4294967040 }
 0x100   :  { %132 = vsyncpa [#allocation4], 1 }

// kernel: causal_self_attention.6
= control target key start
LH: loop header
LB: loop body
LE: loop exit
PB: predicated region body
PF: predicated region fallthrough
CT: control target
= control target key end

     0   :  { %s1173_s12 = smov 0   ;;  %s1175_s13 = smov 0   ;;  %s1375_s0 = inlined_call_operand.vmem [shape: bf16[16,32], index: 0, kind: input, shape index: {}, may-alias: {0,2}]   ;;  %s1376_s1 = inlined_call_operand.vmem [shape: bf16[16,32], index: 1, kind: input, shape index: {}]   ;;  %s1377_s2 = inlined_call_operand.vmem [shape: bf16[16,32], index: 2, kind: input, shape index: {}, may-alias: {0,2}]   ;;  %s1378_s3 = inlined_call_operand.vmem [shape: bf16[16,32], index: 3, kind: output, shape index: {}]  }
   0x1   :  { %s1177_s14 = smov 0  }
   0x2 LB: > { %s32_s15 = sadd.s32 1, %s1134_s13  ;;  %p964_p0 = scmp.ge.s32.totalorder %s1138_s14, 1  ;;  %s1138_s14 = sphi %s1177_s14, %s13_s14   ;;  %s1134_s13 = sphi %s1175_s13, %s1380_s13   ;;  %s1130_s12 = sphi %s1173_s12, %s1379_s12  }
   0x3   : > { %p34_p1 = scmp.ge.s32.totalorder %s32_s15, 2  ;;  %p187_p2 = scmp.lt.s32.totalorder %s1138_s14, 3 }
   0x5   : > { %s1382_s15 = smov (%p34_p1, %s32_s15), 0  ;;  %p188_p3 = pnand %p964_p0, %p187_p2 }
   0x6   : > { %p222_p4 = scmp.lt.s32.totalorder (!%p188_p3), %s1130_s12, 1  ;;  %v1140_v0 = vmov (!%p188_p3), 0.0   ;;  %vm1141_vm0 = vmmov (!%p188_p3), 0   ;;  %vm275_vm1 = vcmask (!%p188_p3), 64512   ;;  %vm251_vm2 = vcmask (!%p188_p3), 31744   ;;  %s1144_s23 = smov (!%p188_p3), 120  }
   0x7   : > { %191 = sbr.rel (%p188_p3) target bundleno = 1417 (0x589), region = 32  ;;  %998 = vmatprep.subr.bf16.mxu0 (!%p188_p3), %v1140_v0  ;;  %1000 = vmatprep.mubr.msk.bf16.mxu0 (!%p188_p3), %vm1141_vm0, %v1140_v0  ;;  %v1142_v5 = vmov (!%p188_p3), -1e+30   ;;  %253 = vst.msk [vmem:[#allocation3] sm:$0xff] (!%p188_p3), %vm251_vm2, %v1140_v0  ;;  %v265_v6 = vlaneseq (!%p188_p3)  ;;  %v1143_v15 = vmov (!%p188_p3), 0   ;;  %s1145_s24 = smov (!%p188_p3), 112  }
   0x8   : > { %1004 = vmatprep.subr.bf16.mxu1 (!%p188_p3), %v1140_v0  ;;  %1006 = vmatprep.mubr.msk.bf16.mxu1 (!%p188_p3), %vm1141_vm0, %v1140_v0  ;;  %252 = vst.msk [vmem:[#allocation2] sm:$0xff] (!%p188_p3), %vm251_vm2, %v1142_v5  ;;  %s1146_s25 = smov (!%p188_p3), 104   ;;  %vm345_vm4 = vcmask (!%p188_p3), 7168   ;;  %vm358_vm5 = vcmask (!%p188_p3), 1043456   ;;  %v1147_v59 = vmov (!%p188_p3), 1   ;;  %v1148_v61 = vmov (!%p188_p3), 2  }
   0x9   : > { %v1213_v7 = vshrl.u32 (!%p188_p3), %v265_v6, 7  ;;  %v1215_v8 = vand.u32 (!%p188_p3), 127, %v265_v6  ;;  %1083 = vset.pattern.permute.xlu0 (!%p188_p3), %v1143_v15  ;;  %1084 = vset.pattern.permute.xlu1 (!%p188_p3), %v1147_v59  ;;  %vm484_vm6 = vcmask (!%p188_p3), 15368   ;;  %v1149_v5 = vmov (!%p188_p3), 3   ;;  %s1150_s29 = smov (!%p188_p3), 8   ;;  %s1151_s30 = smov (!%p188_p3), 16  }
   0xa   : > { %vm254_vm7 = vcmask (!%p188_p3), 261120   ;;  %vm626_vm8 = vcmask (!%p188_p3), 23568   ;;  %vm765_vm9 = vcmask (!%p188_p3), 31768   ;;  %s1152_s4 = smov (!%p188_p3), 24   ;;  %vm550_vm10 = vcmask (!%p188_p3), 130112  }
   0xb   : > { %vm274_vm3 = vcmp.ge.s32.totalorder (!%p188_p3), %v1213_v7, %v1215_v8  ;;  %255 = vst.msk [vmem:[#allocation4] sm:$0xff] (!%p188_p3), %vm254_vm7, %v1140_v0  ;;  %vm689_vm11 = vcmask (!%p188_p3), 195712   ;;  %vm828_vm12 = vcmask (!%p188_p3), 261312   ;;  %vm861_vm13 = vcmask (!%p188_p3), 130048  }
   0xc   : > { %vm863_vm14 = vcmask (!%p188_p3), 195584   ;;  %vm866_vm15 = vcmask (!%p188_p3), 257024  }
   0xe   : > { %s1384_s12 = smov (!%p222_p4, %s1130_s12), 1 }
   0xf   : > { %s1197_s16 = sshll.u32 %s1384_s12, 2  ;;  %v1230_v18 = vld [vmem:[#allocation2] sm:$0xff] }
  0x10   : > { %s231_s19 = scalar_lea.vmem %s1376_s1, %s1197_s16  ;;  %s225_s22 = scalar_lea.vmem %s1375_s0, %s1197_s16 }
  0x11   : > { %v262_v1 = vld [vmem:[%s231_s19] sm:$0xf]  ;;  %s237_s28 = scalar_lea.vmem %s1377_s2, %s1197_s16  ;;  %s243_s7 = scalar_lea.vmem %s1378_s3, %s1197_s16 }
  0x12   : > { %v280_v2 = vsel %vm275_vm1, %v262_v1, 0  ;;  %v260_v3 = vld [vmem:[%s225_s22] sm:$0xf]  ;;  %v972_v16 = vcombine.low %v262_v1, %v262_v1 }
  0x13   : > { %999 = vmatpush3.bf16.xpose.msra.mxu0 %v280_v2  ;;  %v261_v4 = vmul.bf16 1052065461, %v260_v3  ;;  %v1244_v22 = vld [vmem:[%s237_s28] sm:$0xf] }
  0x14   : > { %1016 = vmatprep.subr.bf16.mxu0 %v1140_v0  ;;  %413 = vrot.lane.b32.xlu1 %v972_v16, %s1144_s23  ;;  %v360_v23 = vsel %vm358_vm5, %v1244_v22, 0  ;;  %v974_v3 = vcombine.low %v1244_v22, %v1244_v22 }
  0x15   : > { %v971_v17 = vcombine.low %v261_v4, %v261_v4  ;;  %1005 = vmatpush3.bf16.msra.mxu1 %v360_v23 }
  0x16   : > { %1010 = vmatprep.subr.bf16.mxu1 %v1140_v0 }
  0x18   : > { %408 = vrot.lane.b32.xlu1 %v971_v17, %s1144_s23 }
  0x1a   : > { %1001 = vmatmul.mubr.msk.bf16.vlgmr.msra.gmra.mrb[0].mxu0 %vm275_vm1, %v261_v4 }
  0x1b   : > { %1018 = vmatprep.mubr.msk.bf16.mxu0 %vm1141_vm0, %v1140_v0 }
  0x1c   : > { %555 = vrot.lane.b32.xlu1 %v972_v16, %s1145_s24 }
  0x20   : > { %553 = vrot.lane.b32.xlu1 %v971_v17, %s1145_s24 }
  0x24   : > { %694 = vrot.lane.b32.xlu1 %v972_v16, %s1146_s25 }
  0x28   : > { %692 = vrot.lane.b32.xlu1 %v971_v17, %s1146_s25 }
  0x86   : > { %v414_v27 = vpop.permute.xlu1 %413 }
  0x87   : > { %v419_v30 = vsel %vm275_vm1, %v414_v27, 0  ;;  %v347_v27 = vld [vmem:[#allocation4] sm:$0xff] }
  0x8a   : > { %v409_v28 = vpop.permute.xlu1 %408 }
  0x8e   : > { %v556_v32 = vpop.permute.xlu1 %555 }
  0x8f   : > { %v561_v34 = vsel %vm275_vm1, %v556_v32, 0 }
  0x92   : > { %v554_v33 = vpop.permute.xlu1 %553 }
  0x96   : > { %v695_v35 = vpop.permute.xlu1 %694 }
  0x97   : > { %v700_v36 = vsel %vm275_vm1, %v695_v35, 0 }
  0x9a   : > { %v693_v37 = vpop.permute.xlu1 %692 }
  0xed   : > { %v316_v9 = vpop.f32.mrb[0].mxu0 }
  0xee   : > { %v322_v10 = vsel %vm274_vm3, %v316_v9, -1e+30  ;;  %v1002_v11 = vpop.f32.mrb[1].mxu0 }
  0xef   : > { %v319_v12 = vpop.f32.mrb[2].mxu0  ;;  %v324_v13 = vsel %vm275_vm1, %v322_v10, -inf }
  0xf0   : > { %325 = vmax.xlane.f32.xlu0 %v324_v13  ;;  %v1003_v14 = vpop.f32.mrb[3].mxu0 }
 0x17d   : > { %v326_v19 = vpop.xlane.xlu0 %325 }
 0x17e   : > { %v1233_v20 = vmax.f32 %v1230_v18, %v326_v19 }
 0x180   : > { %v328_v21 = vsub.f32 %v1230_v18, %v1233_v20  ;;  %404 = vst.msk [vmem:[#allocation2] sm:$0xff] %vm345_vm4, %v1233_v20  ;;  %333 = vperm.xlu0 %1083, %v1233_v20  }
 0x182   : > { %v329_v2 = vmul.f32 1.442695, %v328_v21 }
 0x184   : > { %1085 = vset.pattern.permute.xlu0 %v1148_v61 }
 0x187   : > { %v462_v63 = vld [vmem:[#allocation2] sm:$0xff] }
 0x1ff   : > { %v334_v24 = vpop.permute.xlu0 %333 }
 0x200   : > { %v336_v25 = vsub.f32 %v322_v10, %v334_v24 }
 0x202   : > { %v337_v26 = vmul.f32 1.442695, %v336_v25 }
 0x204   : > { %1098 = vpow2.f32 %v337_v26 }
 0x205   : > { %1100 = vpow2.f32 %v329_v2 }
 0x20e   : > { %v1249_v29 = vpop.eup %1098 }
 0x20f   : > { %v354_v31 = vpack.c.bf16 %v1249_v29, %v1249_v29  ;;  %v1307_v10 = vpop.eup %1100  ;;  %v341_v16 = vsel %vm275_vm1, %v1249_v29, 0.0 }
 0x211   : > { %1007 = vmatmul.mubr.msk.bf16.vlgmr.msra.gmra.mrb[0].mxu1 %vm275_vm1, %v354_v31 }
 0x212   : > { %1011 = vmatpush3.bf16.xpose.msra.mxu1 %v419_v30  ;;  %1012 = vmatprep.mubr.msk.bf16.mxu1 %vm1141_vm0, %v1140_v0 }
 0x213   : > { %1022 = vmatprep.subr.bf16.mxu1 %v1140_v0 }
 0x219   : > { %1013 = vmatmul.mubr.msk.bf16.vlgmr.msra.gmra.mrb[4].mxu1 %vm275_vm1, %v409_v28 }
 0x21a   : > { %1023 = vmatpush3.bf16.xpose.msra.mxu1 %v561_v34  ;;  %1024 = vmatprep.mubr.msk.bf16.mxu1 %vm1141_vm0, %v1140_v0 }
 0x21b   : > { %1034 = vmatprep.subr.bf16.mxu1 %v1140_v0 }
 0x221   : > { %1025 = vmatmul.mubr.msk.bf16.vlgmr.msra.gmra.mrb[8].mxu1 %vm275_vm1, %v554_v33 }
 0x222   : > { %1035 = vmatpush3.bf16.xpose.msra.mxu1 %v700_v36  ;;  %1036 = vmatprep.mubr.msk.bf16.mxu1 %vm1141_vm0, %v1140_v0 }
 0x229   : > { %1037 = vmatmul.mubr.msk.bf16.vlgmr.msra.gmra.mrb[12].mxu1 %vm275_vm1, %v693_v37 }
 0x2e4   : > { %v1268_v38 = vpop.f32.mrb[0].mxu1 }
 0x2e5   : > { %v1008_v39 = vpop.f32.mrb[1].mxu1 }
 0x2e6   : > { %v399_v40 = vpop.f32.mrb[2].mxu1 }
 0x2e7   : > { %v1009_v41 = vpop.f32.mrb[3].mxu1 }
 0x2ec   : > { %v455_v42 = vpop.f32.mrb[4].mxu1 }
 0x2ed   : > { %v1273_v43 = vsel %vm274_vm3, %v455_v42, -1e+30  ;;  %v1014_v44 = vpop.f32.mrb[5].mxu1 }
 0x2ee   : > { %v458_v45 = vpop.f32.mrb[6].mxu1  ;;  %v463_v46 = vsel %vm275_vm1, %v1273_v43, -inf }
 0x2ef   : > { %464 = vmax.xlane.f32.xlu1 %v463_v46  ;;  %v1015_v47 = vpop.f32.mrb[7].mxu1 }
 0x2f4   : > { %v597_v48 = vpop.f32.mrb[8].mxu1 }
 0x2f5   : > { %v1280_v49 = vsel %vm274_vm3, %v597_v48, -1e+30  ;;  %v1026_v50 = vpop.f32.mrb[9].mxu1 }
 0x2f6   : > { %v600_v51 = vpop.f32.mrb[10].mxu1  ;;  %v605_v52 = vsel %vm275_vm1, %v1280_v49, -inf }
 0x2f7   : > { %606 = vmax.xlane.f32.xlu0 %v605_v52  ;;  %v1027_v53 = vpop.f32.mrb[11].mxu1 }
 0x2fc   : > { %v736_v54 = vpop.f32.mrb[12].mxu1 }
 0x2fd   : > { %v1287_v55 = vsel %vm274_vm3, %v736_v54, -1e+30  ;;  %v1038_v56 = vpop.f32.mrb[13].mxu1 }
 0x2fe   : > { %v739_v57 = vpop.f32.mrb[14].mxu1  ;;  %v744_v58 = vsel %vm275_vm1, %v1287_v55, -inf }
 0x2ff   : > { %v1039_v60 = vpop.f32.mrb[15].mxu1  ;;  %745 = vmax.xlane.f32.xlu1 %v744_v58 }
 0x37c   : > { %v465_v62 = vpop.xlane.xlu1 %464 }
 0x37d   : > { %v466_v1 = vmax.f32 %v462_v63, %v465_v62 }
 0x37f   : > { %v467_v4 = vsub.f32 %v462_v63, %v466_v1  ;;  %552 = vst.msk [vmem:[#allocation2] sm:$0xff] %vm484_vm6, %v466_v1  ;;  %472 = vperm.xlu1 %1084, %v466_v1  }
 0x381   : > { %v468_v17 = vmul.f32 1.442695, %v467_v4 }
 0x383   : > { %497 = vrot.lane.b32.xlu1 %v974_v3, %s1144_s23  ;;  %1102 = vpow2.f32 %v468_v17 }
 0x384   : > { %1086 = vset.pattern.permute.xlu1 %v1149_v5  ;;  %v607_v6 = vpop.xlane.xlu0 %606 }
 0x386   : > { %v1301_v7 = vld [vmem:[#allocation2] sm:$0xff] }
 0x387   : > { %v608_v8 = vmax.f32 %v1301_v7, %v607_v6 }
 0x389   : > { %v609_v9 = vsub.f32 %v1301_v7, %v608_v8  ;;  %691 = vst.msk [vmem:[#allocation2] sm:$0xff] %vm626_vm8, %v608_v8  ;;  %614 = vperm.xlu0 %1085, %v608_v8  }
 0x38c   : > { %v746_v11 = vpop.xlane.xlu1 %745 }
 0x38d   : > { %1087 = vset.pattern.permute.xlu0 %v1143_v15  ;;  %v1103_v18 = vpop.eup %1102 }
 0x38e   : > { %350 = vperm.xlu0 %1087, %v1307_v10  }
 0x390   : > { %v1311_v12 = vld [vmem:[#allocation2] sm:$0xff] }
 0x391   : > { %v1314_v13 = vmax.f32 %v1311_v12, %v746_v11 }
 0x392   : > { %1090 = vset.pattern.permute.xlu0 %v1149_v5 }
 0x393   : > { %v748_v14 = vsub.f32 %v1311_v12, %v1314_v13  ;;  %830 = vst.msk [vmem:[#allocation2] sm:$0xff] %vm765_vm9, %v1314_v13  ;;  %753 = vperm.xlu1 %1086, %v1314_v13  }
 0x395   : > { %v749_v56 = vmul.f32 1.442695, %v748_v14 }
 0x397   : > { %636 = vrot.lane.b32.xlu1 %v974_v3, %s1145_s24 }
 0x398   : > { %1088 = vset.pattern.permute.xlu1 %v1147_v59 }
 0x39b   : > { %775 = vrot.lane.b32.xlu1 %v974_v3, %s1146_s25 }
 0x3bf   : > { %342 = vadd.xlane.f32.xlu1 %v341_v16 }
 0x3d0   : > { %489 = vperm.xlu1 %1088, %v1103_v18  }
 0x3d4   : > { %1089 = vset.pattern.permute.xlu1 %v1148_v61 }
 0x3fe   : > { %v473_v19 = vpop.permute.xlu1 %472 }
 0x3ff   : > { %v475_v20 = vsub.f32 %v1273_v43, %v473_v19  ;;  %v610_v43 = vmul.f32 1.442695, %v609_v9 }
 0x401   : > { %v476_v21 = vmul.f32 1.442695, %v475_v20 }
 0x402   : > { %v498_v22 = vpop.permute.xlu1 %497 }
 0x403   : > { %1104 = vpow2.f32 %v476_v21  ;;  %v503_v23 = vsel %vm358_vm5, %v498_v22, 0 }
 0x404   : > { %1017 = vmatpush3.bf16.msra.mxu0 %v503_v23 }
 0x405   : > { %1028 = vmatprep.subr.bf16.mxu0 %v1140_v0 }
 0x408   : > { %v615_v24 = vpop.permute.xlu0 %614 }
 0x409   : > { %v617_v25 = vsub.f32 %v1280_v49, %v615_v24  ;;  %v339_v49 = vld [vmem:[#allocation3] sm:$0xff] }
 0x40a   : > { %v340_v50 = vmul.f32 %v1307_v10, %v339_v49 }
 0x40b   : > { %v618_v26 = vmul.f32 1.442695, %v617_v25 }
 0x40d   : > { %v1105_v28 = vpop.eup %1104  ;;  %1106 = vpow2.f32 %v618_v26  ;;  %v351_v29 = vpop.permute.xlu0 %350 }
 0x40e   : > { %v353_v30 = vmul.f32 %v351_v29, %v347_v27  ;;  %v480_v31 = vsel %vm275_vm1, %v1105_v28, 0.0  ;;  %v493_v32 = vpack.c.bf16 %v1105_v28, %v1105_v28 }
 0x40f   : > { %481 = vadd.xlane.f32.xlu0 %v480_v31 }
 0x410   : > { %v402_v33 = vadd.f32 %v1268_v38, %v353_v30  ;;  %1019 = vmatmul.mubr.msk.bf16.vlgmr.msra.gmra.mrb[4].mxu0 %vm275_vm1, %v493_v32 }
 0x411   : > { %1030 = vmatprep.mubr.msk.bf16.mxu0 %vm1141_vm0, %v1140_v0 }
 0x412   : > { %403 = vst.msk [vmem:[#allocation4] sm:$0xff] %vm275_vm1, %v402_v33  ;;  %v754_v34 = vpop.permute.xlu1 %753 }
 0x413   : > { %v756_v35 = vsub.f32 %v1287_v55, %v754_v34 }
 0x415   : > { %v757_v36 = vmul.f32 1.442695, %v756_v35 }
 0x416   : > { %v637_v37 = vpop.permute.xlu1 %636 }
 0x417   : > { %v1107_v39 = vpop.eup %1106  ;;  %1108 = vpow2.f32 %v757_v36  ;;  %v642_v40 = vsel %vm358_vm5, %v637_v37, 0 }
 0x418   : > { %1029 = vmatpush3.bf16.msra.mxu0 %v642_v40  ;;  %v622_v41 = vsel %vm275_vm1, %v1107_v39, 0.0  ;;  %v635_v38 = vpack.c.bf16 %v1107_v39, %v1107_v39  ;;  %1110 = vpow2.f32 %v610_v43 }
 0x419   : > { %623 = vadd.xlane.f32.xlu1 %v622_v41  ;;  %1040 = vmatprep.subr.bf16.mxu0 %v1140_v0  ;;  %1112 = vpow2.f32 %v749_v56  ;;  %v486_v20 = vld [vmem:[#allocation4] sm:$0xff] }
 0x41a   : > { %v776_v42 = vpop.permute.xlu1 %775 }
 0x41b   : > { %1031 = vmatmul.mubr.msk.bf16.vlgmr.msra.gmra.mrb[8].mxu0 %vm275_vm1, %v635_v38  ;;  %v781_v44 = vsel %vm358_vm5, %v776_v42, 0 }
 0x41c   : > { %1041 = vmatpush3.bf16.msra.mxu0 %v781_v44  ;;  %1042 = vmatprep.mubr.msk.bf16.mxu0 %vm1141_vm0, %v1140_v0 }
 0x421   : > { %v1109_v45 = vpop.eup %1108 }
 0x422   : > { %v761_v46 = vsel %vm275_vm1, %v1109_v45, 0.0  ;;  %v774_v47 = vpack.c.bf16 %v1109_v45, %v1109_v45  ;;  %v1111_v48 = vpop.eup %1110 }
 0x423   : > { %762 = vadd.xlane.f32.xlu0 %v761_v46  ;;  %v1113_v63 = vpop.eup %1112 }
 0x424   : > { %1043 = vmatmul.mubr.msk.bf16.vlgmr.msra.gmra.mrb[12].mxu0 %vm275_vm1, %v774_v47 }
 0x42a   : > { %631 = vperm.xlu1 %1089, %v1111_v48  }
 0x42e   : > { %1091 = vset.pattern.permute.xlu1 %v1143_v15 }
 0x44c   : > { %v343_v51 = vpop.xlane.xlu1 %342 }
 0x44d   : > { %v344_v52 = vadd.f32 %v343_v51, %v340_v50 }
 0x44f   : > { %346 = vst.msk [vmem:[#allocation3] sm:$0xff] %vm345_vm4, %v344_v52 }
 0x450   : > { %v490_v57 = vpop.permute.xlu1 %489 }
 0x451   : > { %v492_v21 = vmul.f32 %v490_v57, %v486_v20 }
 0x456   : > { %v478_v0 = vld [vmem:[#allocation3] sm:$0xff] }
 0x457   : > { %v479_v53 = vmul.f32 %v1103_v18, %v478_v0 }
 0x49c   : > { %v482_v54 = vpop.xlane.xlu0 %481 }
 0x49d   : > { %v483_v55 = vadd.f32 %v482_v54, %v479_v53 }
 0x49f   : > { %485 = vst.msk [vmem:[#allocation3] sm:$0xff] %vm484_vm6, %v483_v55 }
 0x4a6   : > { %v620_v58 = vld [vmem:[#allocation3] sm:$0xff]  ;;  %v624_v60 = vpop.xlane.xlu1 %623 }
 0x4a7   : > { %v621_v15 = vmul.f32 %v1111_v48, %v620_v58 }
 0x4a9   : > { %v625_v62 = vadd.f32 %v624_v60, %v621_v15 }
 0x4aa   : > { %v632_v24 = vpop.permute.xlu1 %631 }
 0x4ab   : > { %627 = vst.msk [vmem:[#allocation3] sm:$0xff] %vm626_vm8, %v625_v62 }
 0x4b0   : > { %v763_v3 = vpop.xlane.xlu0 %762 }
 0x4b2   : > { %v759_v1 = vld [vmem:[#allocation3] sm:$0xff] }
 0x4b3   : > { %v760_v2 = vmul.f32 %v1113_v63, %v759_v1 }
 0x4b5   : > { %v764_v4 = vadd.f32 %v763_v3, %v760_v2 }
 0x4b7   : > { %766 = vst.msk [vmem:[#allocation3] sm:$0xff] %vm765_vm9, %v764_v4 }
 0x4be   : > { %v835_v6 = vld [vmem:[#allocation3] sm:$0xff] }
 0x4bf   : > { %1114 = vrcp.f32 %v835_v6 }
 0x4c9   : > { %v1115_v7 = vpop.eup %1114 }
 0x4ca   : > { %840 = vperm.xlu1 %1091, %v1115_v7  }
 0x4ce   : > { %1093 = vset.pattern.permute.xlu1 %v1148_v61 }
 0x4cf   : > { %850 = vperm.xlu1 %1093, %v1115_v7  }
 0x4d3   : > { %1094 = vset.pattern.permute.xlu1 %v1149_v5 }
 0x4d4   : > { %855 = vperm.xlu1 %1094, %v1115_v7  }
 0x4e3   : > { %v539_v8 = vpop.f32.mrb[4].mxu0 }
 0x4e4   : > { %546 = vrot.lane.b32.xlu0 %v539_v8, %s1150_s29  ;;  %v1020_v9 = vpop.f32.mrb[5].mxu0 }
 0x4e5   : > { %v542_v10 = vpop.f32.mrb[6].mxu0 }
 0x4e6   : > { %v1021_v11 = vpop.f32.mrb[7].mxu0 }
 0x4ee   : > { %v678_v12 = vpop.f32.mrb[8].mxu0 }
 0x4ef   : > { %685 = vrot.lane.b32.xlu0 %v678_v12, %s1151_s30  ;;  %v1032_v13 = vpop.f32.mrb[9].mxu0 }
 0x4f0   : > { %v681_v14 = vpop.f32.mrb[10].mxu0 }
 0x4f1   : > { %v1033_v16 = vpop.f32.mrb[11].mxu0 }
 0x4f3   : > { %770 = vperm.xlu0 %1090, %v1113_v63  }
 0x4f7   : > { %v817_v17 = vpop.f32.mrb[12].mxu0  ;;  %1092 = vset.pattern.permute.xlu0 %v1147_v59 }
 0x4f8   : > { %824 = vrot.lane.b32.xlu0 %v817_v17, %s1152_s4  ;;  %v1044_v61 = vpop.f32.mrb[13].mxu0 }
 0x4f9   : > { %v820_v18 = vpop.f32.mrb[14].mxu0 }
 0x4fa   : > { %v1045_v19 = vpop.f32.mrb[15].mxu0 }
 0x4fc   : > { %845 = vperm.xlu0 %1092, %v1115_v7  }
 0x500   : > { %1095 = vset.pattern.permute.xlu0 %v1149_v5 }
 0x549   : > { %v841_v31 = vpop.permute.xlu1 %840 }
 0x54e   : > { %v851_v33 = vpop.permute.xlu1 %850 }
 0x553   : > { %v856_v40 = vpop.permute.xlu1 %855 }
 0x556   : > { %v547_v22 = vpop.permute.xlu0 %546 }
 0x557   : > { %v549_v23 = vadd.f32 %v547_v22, %v492_v21 }
 0x559   : > { %551 = vst.msk [vmem:[#allocation4] sm:$0xff] %vm550_vm10, %v549_v23 }
 0x560   : > { %v628_v25 = vld [vmem:[#allocation4] sm:$0xff] }
 0x561   : > { %v634_v26 = vmul.f32 %v632_v24, %v628_v25  ;;  %v686_v27 = vpop.permute.xlu0 %685 }
 0x563   : > { %v688_v59 = vadd.f32 %v686_v27, %v634_v26 }
 0x565   : > { %690 = vst.msk [vmem:[#allocation4] sm:$0xff] %vm689_vm11, %v688_v59 }
 0x56c   : > { %v767_v29 = vld [vmem:[#allocation4] sm:$0xff] }
 0x572   : > { %v771_v28 = vpop.permute.xlu0 %770 }
 0x573   : > { %v773_v30 = vmul.f32 %v771_v28, %v767_v29 }
 0x576   : > { %v825_v5 = vpop.permute.xlu0 %824 }
 0x577   : > { %v827_v32 = vadd.f32 %v825_v5, %v773_v30 }
 0x579   : > { %829 = vst.msk [vmem:[#allocation4] sm:$0xff] %vm828_vm12, %v827_v32 }
 0x57b   : > { %v846_v35 = vpop.permute.xlu0 %845 }
 0x580   : > { %v837_v34 = vld [vmem:[#allocation4] sm:$0xff] }
 0x581   : > { %v843_v36 = vmul.f32 %v841_v31, %v837_v34  ;;  %v853_v37 = vmul.f32 %v851_v33, %v837_v34  ;;  %v848_v39 = vmul.f32 %v846_v35, %v837_v34  ;;  %v858_v41 = vmul.f32 %v856_v40, %v837_v34 }
 0x583   : > { %v860_v38 = vsel %vm275_vm1, %v843_v36, %v848_v39 }
 0x584   : > { %v862_v42 = vsel %vm861_vm13, %v860_v38, %v853_v37 }
 0x585   : > { %v864_v43 = vsel %vm863_vm14, %v862_v42, %v858_v41 }
 0x586   : > { %v865_v44 = vpack.c.bf16 %v864_v43, %v864_v43 }
 0x588   : > { %867 = vst.msk [vmem:[%s243_s7] sm:$0xf] %vm866_vm15, %v865_v44 }
 0x589 PF: > { %s13_s14 = sadd.s32 1, %s1138_s14   ;;  %s1379_s12 = smov %s1134_s13 }
 0x58a   : > { %p10_p5 = scmp.ge.s32.totalorder %s13_s14, 4   ;;  %s1380_s13 = smov %s1382_s15 }
 0x58c   :  { %12 = sbr.rel (!%p10_p5) target bundleno = 2 (0x2), region = 80 }

</bundles_post_ra>
